<compile_context>
chip_gen: v7x
topology: tpu7x:2x2x1
jax: 0.10.0
libtpu: 0.0.40
codegen_flags: <defaults>
</compile_context>

<pallas_src>
import jax
import jax.numpy as jnp
from jax import lax
from jax.experimental import pallas as pl
from jax.experimental.pallas import tpu as pltpu


def _head_kernel(x_ref, wqkv_ref, wo_ref, o_ref):
    Bb, C, F = x_ref.shape          # block_b batches, F == 2
    H, O = wo_ref.shape
    N = Bb * C                      # flattened (batch, position) rows

    # Collapse (Bb, C) -> rows; leading-dim collapse is layout-free.
    x2d = x_ref[...].reshape(N, F).astype(jnp.float32)            # (N, 2)

    # Fused QKV projection: one depth-2 MXU dot. Columns = [q | k | v];
    # softmax scale is pre-folded into the q columns by the wrapper.
    qkv = jnp.dot(x2d, wqkv_ref[...].astype(jnp.float32),
                  preferred_element_type=jnp.float32)              # (N, 3H)
    q = qkv[:, 0:H]
    k = qkv[:, H:2 * H]
    v = qkv[:, 2 * H:3 * H]

    # Scores: one 2-D dot over all packed batches, contracting the head dim
    # of both operands directly (no k.T materialization).
    s = lax.dot_general(q, k, (((1,), (1,)), ((), ())),
                        preferred_element_type=jnp.float32)        # (N, N)

    # Combined causal + batch-block-diagonal mask. Cross-batch entries MUST
    # be -inf (not 0) so they never contribute to any softmax denominator.
    r = lax.broadcasted_iota(jnp.int32, (N, N), 0)
    c = lax.broadcasted_iota(jnp.int32, (N, N), 1)
    if C & (C - 1) == 0:
        # Power-of-two context length: pure shift/and on the VPU.
        sh = C.bit_length() - 1
        same_batch = (r >> sh) == (c >> sh)
        causal = (c & (C - 1)) <= (r & (C - 1))
    else:
        same_batch = (r // C) == (c // C)
        causal = (c % C) <= (r % C)
    s = jnp.where(same_batch & causal, s, -jnp.inf)

    # Exact softmax along the last dim. The diagonal is always unmasked, so
    # every row (including any zero-padded batch rows) has a finite max and a
    # denominator >= 1 -> no NaNs.
    m = jnp.max(s, axis=-1, keepdims=True)
    e = jnp.exp(s - m)
    p = e / jnp.sum(e, axis=-1, keepdims=True)                     # (N, N)

    attn = jnp.dot(p, v, preferred_element_type=jnp.float32)       # (N, H)
    out = jnp.dot(attn, wo_ref[...].astype(jnp.float32),
                  preferred_element_type=jnp.float32)              # (N, O)

    # Leading-dim split (layout-free), single store of the whole block.
    # TODO(synk): see header — lane-dense (C*O) slab / multi-head fusion.
    o_ref[...] = out.reshape(Bb, C, O).astype(o_ref.dtype)


def head_forward(x, wk_t, wq_t, wv_t, wo_t, *, head_size, block_b=None):
    """x: (B, C, 2); w*_t: pre-transposed (in, out) Linear weights."""
    B, C, F = x.shape
    H = head_size
    O = wo_t.shape[1]
    assert wk_t.shape == (F, H) and wq_t.shape == (F, H) and wv_t.shape == (F, H)
    assert wo_t.shape[0] == H

    # Fused projection weight, columns ordered [q | k | v]; the softmax scale
    # H**-0.5 is folded into the q columns here (O(F*H) trace-time work).
    scale = H ** -0.5
    wqkv = jnp.concatenate([wq_t * scale, wk_t, wv_t], axis=1)     # (F, 3H)

    if block_b is None:
        # One grid step whenever the flattened (block_b*C)^2 score matrix
        # fits a 128-lane tile; the grid is a sequential loop on one
        # TensorCore, so extra steps are pure per-step overhead here.
        block_b = max(1, min(B, 128 // max(C, 1)))
    grid_b = pl.cdiv(B, block_b)
    Bp = grid_b * block_b
    xp = x
    if Bp != B:
        # Rare fallback only (B > 128//C and not divisible by block_b).
        # Zero rows stay finite through the masked softmax and are sliced off.
        xp = jnp.pad(x, ((0, Bp - B), (0, 0), (0, 0)))

    out = pl.pallas_call(
        _head_kernel,
        out_shape=jax.ShapeDtypeStruct((Bp, C, O), jnp.float32),
        grid_spec=pltpu.PrefetchScalarGridSpec(
            num_scalar_prefetch=0,
            grid=(grid_b,),
            in_specs=[
                pl.BlockSpec((block_b, C, F), lambda b: (b, 0, 0)),  # x block
                pl.BlockSpec((F, 3 * H), lambda b: (0, 0)),          # W_qkv
                pl.BlockSpec((H, O), lambda b: (0, 0)),              # W_o
            ],
            out_specs=pl.BlockSpec((block_b, C, O), lambda b: (b, 0, 0)),
        ),
        compiler_params=pltpu.CompilerParams(
            dimension_semantics=("parallel",)),
    )(xp, wqkv, wo_t)
    return out[:B]


def _reference(x, wk_t, wq_t, wv_t, wo_t, head_size):
    k = x @ wk_t
    q = x @ wq_t
    v = x @ wv_t
    wei = (q @ jnp.swapaxes(k, -2, -1)) * head_size ** (-0.5)
    C = x.shape[1]
    mask = jnp.tril(jnp.ones((C, C), jnp.bool_))
    wei = jnp.where(mask, wei, -jnp.inf)
    wei = jax.nn.softmax(wei, axis=-1)
    return (wei @ v) @ wo_t


if __name__ == "__main__":
    context_len = 8          # C
    head_size = 32           # H
    output_dim = 16          # O
    feat = 2                 # Linear(2, head_size) input features

    key = jax.random.PRNGKey(0)
    kk, kq, kv, ko, kx = jax.random.split(key, 5)

    # PyTorch Linear weights are (out, in); we store them transposed (in, out).
    wk_t = jax.random.normal(kk, (feat, head_size), jnp.float32) * 0.1
    wq_t = jax.random.normal(kq, (feat, head_size), jnp.float32) * 0.1
    wv_t = jax.random.normal(kv, (feat, head_size), jnp.float32) * 0.1
    wo_t = jax.random.normal(ko, (head_size, output_dim), jnp.float32) * 0.1

    ok = True
    # B=2 and B=5: both take the single-grid-step (no padding) fast path.
    for batch_size in (2, 5):
        kx, sub = jax.random.split(kx)
        x = jax.random.normal(sub, (batch_size, context_len, feat), jnp.float32)

        out = head_forward(x, wk_t, wq_t, wv_t, wo_t, head_size=head_size)
        out = jax.block_until_ready(out)

        ref = _reference(x, wk_t, wq_t, wv_t, wo_t, head_size)
        assert out.shape == (batch_size, context_len, output_dim)
        # Exact softmax (no approx reciprocal any more); remaining tolerance
        # headroom only covers MXU f32 pass-rounding differences vs the XLA
        # reference matmuls.
        ok &= bool(jnp.allclose(out, ref, atol=1e-3, rtol=1e-3))
    assert ok

    print("KERNEL_OK")
</pallas_src>

<mosaic_0001>
module attributes {stable_mosaic.version = 11 : i64} {
  func.func @_head_kernel(%arg0: i32, %arg1: memref<2x8x2xf32, #tpu.memory_space<vmem>>, %arg2: memref<2x96xf32, #tpu.memory_space<vmem>>, %arg3: memref<32x16xf32, #tpu.memory_space<vmem>>, %arg4: memref<2x8x16xf32, #tpu.memory_space<vmem>>) attributes {dimension_semantics = [#tpu.dimension_semantics<parallel>], iteration_bounds = array<i64: 1>, scalar_prefetch = 0 : i64, scratch_operands = 0 : i64, tpu.core_type = #tpu.core_type<tc>, window_params = [{transform_indices = @transform_0, window_bounds = array<i64: 2, 8, 2>}, {pipeline_mode = #tpu.pipeline_mode<synchronous>, transform_indices = @transform_1, window_bounds = array<i64: 2, 96>}, {pipeline_mode = #tpu.pipeline_mode<synchronous>, transform_indices = @transform_2, window_bounds = array<i64: 32, 16>}, {transform_indices = @transform_3, window_bounds = array<i64: 2, 8, 16>}]} {
    %c0 = arith.constant 0 : index
    %c0_0 = arith.constant 0 : index
    %c0_1 = arith.constant 0 : index
    %0 = vector.load %arg1[%c0, %c0_0, %c0_1] : memref<2x8x2xf32, #tpu.memory_space<vmem>>, vector<2x8x2xf32>
    %1 = vector.shape_cast %0 : vector<2x8x2xf32> to vector<16x2xf32>
    %c0_2 = arith.constant 0 : index
    %c0_3 = arith.constant 0 : index
    %2 = vector.load %arg2[%c0_2, %c0_3] : memref<2x96xf32, #tpu.memory_space<vmem>>, vector<2x96xf32>
    %cst = arith.constant dense<0.000000e+00> : vector<16x96xf32>
    %3 = tpu.matmul %1, %2, %cst {dimension_numbers = #tpu.dot_dimension_numbers<[1], [0], [0], [1], [0, 0, 1, 1], [], []>} : vector<16x2xf32>, vector<2x96xf32>, vector<16x96xf32> -> vector<16x96xf32>
    %4 = vector.extract_strided_slice %3 {offsets = [0, 0], sizes = [16, 32], strides = [1, 1]} : vector<16x96xf32> to vector<16x32xf32>
    %5 = vector.extract_strided_slice %3 {offsets = [0, 32], sizes = [16, 32], strides = [1, 1]} : vector<16x96xf32> to vector<16x32xf32>
    %6 = vector.extract_strided_slice %3 {offsets = [0, 64], sizes = [16, 32], strides = [1, 1]} : vector<16x96xf32> to vector<16x32xf32>
    %cst_4 = arith.constant dense<0.000000e+00> : vector<16x16xf32>
    %7 = tpu.matmul %4, %5, %cst_4 {dimension_numbers = #tpu.dot_dimension_numbers<[1], [1], [0], [0], [0, 0, 1, 0], [], []>} : vector<16x32xf32>, vector<16x32xf32>, vector<16x16xf32> -> vector<16x16xf32>
    %8 = tpu.iota {dimensions = array<i32: 0>} : vector<16x16xi32>
    %9 = tpu.iota {dimensions = array<i32: 1>} : vector<16x16xi32>
    %c3_i32 = arith.constant 3 : i32
    %10 = vector.broadcast %c3_i32 : i32 to vector<16x16xi32>
    %11 = arith.shrsi %8, %10 : vector<16x16xi32>
    %c3_i32_5 = arith.constant 3 : i32
    %12 = vector.broadcast %c3_i32_5 : i32 to vector<16x16xi32>
    %13 = arith.shrsi %9, %12 : vector<16x16xi32>
    %14 = arith.cmpi eq, %11, %13 : vector<16x16xi32>
    %c7_i32 = arith.constant 7 : i32
    %15 = vector.broadcast %c7_i32 : i32 to vector<16x16xi32>
    %16 = arith.andi %9, %15 : vector<16x16xi32>
    %c7_i32_6 = arith.constant 7 : i32
    %17 = vector.broadcast %c7_i32_6 : i32 to vector<16x16xi32>
    %18 = arith.andi %8, %17 : vector<16x16xi32>
    %19 = arith.cmpi sle, %16, %18 : vector<16x16xi32>
    %20 = arith.andi %14, %19 : vector<16x16xi1>
    %cst_7 = arith.constant 0xFF800000 : f32
    %21 = vector.broadcast %cst_7 : f32 to vector<16x16xf32>
    %22 = arith.select %20, %7, %21 : vector<16x16xi1>, vector<16x16xf32>
    %cst_8 = arith.constant dense<0xFF800000> : vector<16xf32>
    %23 = vector.multi_reduction <maximumf>, %22, %cst_8 [1] : vector<16x16xf32> to vector<16xf32>
    %24 = vector.shape_cast %23 : vector<16xf32> to vector<16x1xf32>
    %25 = vector.broadcast %24 : vector<16x1xf32> to vector<16x16xf32>
    %26 = arith.subf %22, %25 : vector<16x16xf32>
    %27 = math.exp %26 : vector<16x16xf32>
    %cst_9 = arith.constant dense<0.000000e+00> : vector<16xf32>
    %28 = vector.multi_reduction <add>, %27, %cst_9 [1] : vector<16x16xf32> to vector<16xf32>
    %29 = vector.shape_cast %28 : vector<16xf32> to vector<16x1xf32>
    %30 = vector.broadcast %29 : vector<16x1xf32> to vector<16x16xf32>
    %31 = arith.divf %27, %30 : vector<16x16xf32>
    %cst_10 = arith.constant dense<0.000000e+00> : vector<16x32xf32>
    %32 = tpu.matmul %31, %6, %cst_10 {dimension_numbers = #tpu.dot_dimension_numbers<[1], [0], [0], [1], [0, 0, 1, 1], [], []>} : vector<16x16xf32>, vector<16x32xf32>, vector<16x32xf32> -> vector<16x32xf32>
    %c0_11 = arith.constant 0 : index
    %c0_12 = arith.constant 0 : index
    %33 = vector.load %arg3[%c0_11, %c0_12] : memref<32x16xf32, #tpu.memory_space<vmem>>, vector<32x16xf32>
    %cst_13 = arith.constant dense<0.000000e+00> : vector<16x16xf32>
    %34 = tpu.matmul %32, %33, %cst_13 {dimension_numbers = #tpu.dot_dimension_numbers<[1], [0], [0], [1], [0, 0, 1, 1], [], []>} : vector<16x32xf32>, vector<32x16xf32>, vector<16x16xf32> -> vector<16x16xf32>
    %35 = vector.shape_cast %34 : vector<16x16xf32> to vector<2x8x16xf32>
    %c0_14 = arith.constant 0 : index
    %c0_15 = arith.constant 0 : index
    %c0_16 = arith.constant 0 : index
    %36 = vector.load %arg4[%c0_14, %c0_15, %c0_16] : memref<2x8x16xf32, #tpu.memory_space<vmem>>, vector<2x8x16xf32>
    tpu.vector_store %arg4[%c0_14, %c0_15, %c0_16], %35 {strides = array<i32>} : memref<2x8x16xf32, #tpu.memory_space<vmem>>, vector<2x8x16xf32>,
    return
  }
  func.func @transform_0(%arg0: i32) -> (i32, i32, i32) {
    %c0_i32 = arith.constant 0 : i32
    %c0_i32_0 = arith.constant 0 : i32
    %c0_i32_1 = arith.constant 0 : i32
    return %arg0, %c0_i32, %c0_i32_0 : i32, i32, i32
  }
  func.func @transform_1(%arg0: i32) -> (i32, i32) {
    %c0_i32 = arith.constant 0 : i32
    %c0_i32_0 = arith.constant 0 : i32
    %c0_i32_1 = arith.constant 0 : i32
    return %c0_i32, %c0_i32_0 : i32, i32
  }
  func.func @transform_2(%arg0: i32) -> (i32, i32) {
    %c0_i32 = arith.constant 0 : i32
    %c0_i32_0 = arith.constant 0 : i32
    %c0_i32_1 = arith.constant 0 : i32
    return %c0_i32, %c0_i32_0 : i32, i32
  }
  func.func @transform_3(%arg0: i32) -> (i32, i32, i32) {
    %c0_i32 = arith.constant 0 : i32
    %c0_i32_0 = arith.constant 0 : i32
    %c0_i32_1 = arith.constant 0 : i32
    return %arg0, %c0_i32, %c0_i32_0 : i32, i32, i32
  }
}

</mosaic_0001>

<bundles_post_ra>
// kernel: tpu_custom_call.1
= control target key start
LH: loop header
LB: loop body
LE: loop exit
PB: predicated region body
PF: predicated region fallthrough
CT: control target
= control target key end

     0   :  { %vm25_vm0 = vcmask 1041408   ;;  %vm18_vm1 = vcmask 15360   ;;  %s621_s0 = inlined_call_operand.vmem [shape: f32[2,8,2], index: 0, kind: input, shape index: {}]   ;;  %s622_s1 = inlined_call_operand.vmem [shape: f32[2,96], index: 1, kind: input, shape index: {}]   ;;  %s623_s2 = inlined_call_operand.vmem [shape: f32[32,16], index: 2, kind: input, shape index: {}]   ;;  %s624_s3 = inlined_call_operand.hbm [shape: f32[2,8,16], index: 3, kind: output, shape index: {}]  }
   0x1   :  { %v17_v0 = vld [vmem:[%s622_s1] sm:$0x3]  ;;  %v16_v2 = vld [vmem:[%s621_s0 + $0x8] sm:$0xff] }
   0x2   :  { %v15_v1 = vld [vmem:[%s621_s0] sm:$0xff]  ;;  %454 = vmatprep.subr.msk.mxu1 %vm25_vm0, %v17_v0 }
   0x3   :  { %456 = vmatprep.mubr.msk.f32.mxu1 %vm18_vm1, %v15_v1 }
   0x4   :  { %8 = vsyncpa [#allocation3], 0  ;;  %455 = vmatpush3.msk.msra.mxu1 %vm25_vm0, %v17_v0  ;;  %vm110_vm2 = vcmask 261120   ;;  %s549_s1 = smov 96   ;;  %v194_v10 = vlaneseq  ;;  %vm213_vm10 = vcmask 130048   ;;  %s550_s0 = smov 64  }
   0x5   :  { %457 = vmatmul.mubr.msk.f32.vlgmr.msra.gmra.mrb[0].mxu1 %vm18_vm1, %v16_v2  ;;  %vm485_vm3 = vmpackc.low %vm110_vm2, %vm110_vm2  ;;  %v323_v39 = vld [vmem:[%s623_s2] sm:$0xff]  ;;  %v324_v40 = vld [vmem:[%s623_s2 + $0x8] sm:$0xff]  ;;  %s551_s26 = smov [#allocation2]  }
   0x6   :  { %v195_v11 = vshrl.u32 %v194_v10, 7  ;;  %v198_v13 = vand.u32 127, %v194_v10  ;;  %v494_v44 = vpack.c.bf16 %v324_v40, %v323_v39  ;;  %v325_v46 = vld [vmem:[%s623_s2 + $0x10] sm:$0xff]  ;;  %v326_v47 = vld [vmem:[%s623_s2 + $0x18] sm:$0xff]  ;;  %s415_s2 = sshll.u32 %s551_s26, 4  ;;  %s416_s2 = int_to_ptr.vmem [resolvable:$true] %s415_s2 }
   0x7   :  { %v498_v51 = vpack.c.bf16 %v326_v47, %v325_v46  ;;  %s525_s27 = scalar_lea.vmem %s416_s2, 256  ;;  %p530_p1 = scmp.lt.s32.totalorder %s416_s2, %s416_s2 }
   0x8   :  { %v196_v12 = vadd.s32 8, %v195_v11  ;;  %v201_v15 = vshra.s32 %v198_v13, 3  ;;  %v204_v16 = vand.u32 7, %v198_v13  ;;  %v199_v18 = vshra.s32 %v195_v11, 3  ;;  %p526_p0 = scmp.ne.s32.totalorder %s416_s2, %s525_s27  ;;  %p531_p2 = scmp.lt.s32.totalorder %s525_s27, %s525_s27 }
   0x9   :  { %v205_v19 = vand.u32 7, %v195_v11 }
   0xa   :  { %v200_v14 = vshra.s32 %v196_v12, 3  ;;  %v206_v17 = vand.u32 7, %v196_v12  ;;  %vm202_vm6 = vcmp.eq.s32.totalorder %v199_v18, %v201_v15  ;;  %p532_p3 = por %p531_p2, %p530_p1 }
   0xb   :  { %vm207_vm7 = vcmp.le.s32.totalorder %v204_v16, %v205_v19 }
   0xc   :  { %vm203_vm4 = vcmp.eq.s32.totalorder %v200_v14, %v201_v15  ;;  %vm208_vm5 = vcmp.le.s32.totalorder %v204_v16, %v206_v17  ;;  %vm209_vm9 = vmand %vm202_vm6, %vm207_vm7  ;;  %p533_p4 = pnand %p532_p3, %p526_p0 }
   0xd   :  { %vm210_vm8 = vmand %vm203_vm4, %vm208_vm5 }
  0xd8   :  { %v458_v3 = vpop.f32.mrb[0].mxu1 }
  0xd9   :  { %v95_v4 = vpop.f32.mrb[1].mxu1 }
  0xda   :  { %v512_v5 = vpack.i.bf16 %v458_v3, %v95_v4  ;;  %463 = vmatprep.mubr.msk.f32.mxu1 %vm110_vm2, %v95_v4 }
  0xdc   :  { %508 = vrot.lane.b32.xlu0 %v512_v5, %s549_s1 }
 0x14e   :  { %v509_v6 = vpop.permute.xlu0 %508 }
 0x14f   :  { %v511_v7 = vunpack.i.h.bf16 %v509_v6  ;;  %v510_v8 = vunpack.i.l.bf16 %v509_v6 }
 0x151   :  { %v484_v9 = vpack.c.bf16 %v511_v7, %v510_v8 }
 0x153   :  { %486 = vmatprep.subr.msk.bf16.mxu1 %vm485_vm3, %v484_v9 }
 0x154   :  { %489 = vmatpush3.bf16.xpose.msk.msra.mxu1 %vm485_vm3, %v484_v9 }
 0x15b   :  { %464 = vmatmul.mubr.msk.f32.vlgmr.msra.gmra.mrb[2].mxu1 %vm110_vm2, %v458_v3 }
 0x22e   :  { %v465_v20 = vpop.f32.mrb[2].mxu1 }
 0x22f   :  { %v212_v21 = vsel %vm210_vm8, %v465_v20, -inf  ;;  %v185_v22 = vpop.f32.mrb[3].mxu1 }
 0x230   :  { %v211_v23 = vsel %vm209_vm9, %v185_v22, -inf  ;;  %v217_v24 = vsel %vm213_vm10, %v212_v21, -inf }
 0x231   :  { %218 = vmax.xlane.f32.xlu1 %v217_v24  ;;  %v214_v25 = vsel %vm213_vm10, %v211_v23, -inf }
 0x232   :  { %215 = vmax.xlane.f32.xlu0 %v214_v25 }
 0x2be   :  { %v219_v26 = vpop.xlane.xlu1 %218 }
 0x2bf   :  { %v221_v27 = vsub.f32 %v212_v21, %v219_v26  ;;  %v216_v28 = vpop.xlane.xlu0 %215 }
 0x2c0   :  { %v220_v29 = vsub.f32 %v211_v23, %v216_v28 }
 0x2c1   :  { %v224_v30 = vmul.f32 1.442695, %v221_v27 }
 0x2c2   :  { %v222_v31 = vmul.f32 1.442695, %v220_v29 }
 0x2c3   :  { %517 = vpow2.f32 %v224_v30 }
 0x2c4   :  { %519 = vpow2.f32 %v222_v31 }
 0x2cd   :  { %v518_v32 = vpop.eup %517 }
 0x2ce   :  { %v229_v33 = vsel %vm213_vm10, %v518_v32, 0.0  ;;  %v520_v34 = vpop.eup %519 }
 0x2cf   :  { %230 = vadd.xlane.f32.xlu1 %v229_v33  ;;  %v226_v35 = vsel %vm213_vm10, %v520_v34, 0.0 }
 0x2d3   :  { %227 = vadd.xlane.f32.xlu1 %v226_v35 }
 0x2e4   :  { %513 = vrot.lane.b32.xlu1 %v512_v5, %s550_s0 }
 0x35c   :  { %v231_v36 = vpop.xlane.xlu1 %230 }
 0x35d   :  { %521 = vrcp.f32 %v231_v36 }
 0x360   :  { %v228_v37 = vpop.xlane.xlu1 %227 }
 0x361   :  { %523 = vrcp.f32 %v228_v37 }
 0x364   :  { %v514_v38 = vpop.permute.xlu1 %513 }
 0x365   :  { %v516_v41 = vunpack.i.h.bf16 %v514_v38  ;;  %v515_v42 = vunpack.i.l.bf16 %v514_v38 }
 0x367   :  { %v490_v43 = vpack.c.bf16 %v516_v41, %v515_v42  ;;  %v522_v45 = vpop.eup %521 }
 0x368   :  { %v235_v50 = vmul.f32 %v522_v45, %v518_v32 }
 0x369   :  { %491 = vmatprep.subr.bf16.mxu0 %v490_v43 }
 0x36a   :  { %493 = vmatpush3.bf16.msra.mxu0 %v490_v43 }
 0x36b   :  { %v524_v48 = vpop.eup %523  ;;  %495 = vmatprep.subr.bf16.mxu0 %v494_v44 }
 0x36c   :  { %v233_v49 = vmul.f32 %v524_v48, %v520_v34 }
 0x36e   :  { %470 = vmatprep.mubr.msk.f32.mxu0 %vm213_vm10, %v233_v49 }
 0x36f   :  { %471 = vmatmul.mubr.msk.f32.vlgmr.msra.gmra.mrb[0].mxu0 %vm213_vm10, %v235_v50 }
 0x370   :  { %497 = vmatpush3.bf16.msra.mxu0 %v494_v44 }
 0x371   :  { %499 = vmatprep.subr.bf16.mxu0 %v498_v51 }
 0x374   :  { %501 = vmatpush3.bf16.msra.mxu0 %v498_v51 }
 0x442   :  { %v472_v52 = vpop.f32.mrb[0].mxu0 }
 0x443   :  { %v314_v53 = vpop.f32.mrb[1].mxu0 }
 0x444   :  { %481 = vmatprep.mubr.msk.f32.mxu0 %vm110_vm2, %v314_v53 }
 0x445   :  { %482 = vmatmul.mubr.msk.f32.vlgmr.msra.gmra.mrb[2].mxu0 %vm110_vm2, %v472_v52 }
 0x518   :  { %v483_v54 = vpop.f32.mrb[2].mxu0 }
 0x519   :  { %409 = vst.msk [vmem:[#allocation2 + $0x8] sm:$0xff] %vm213_vm10, %v483_v54  ;;  %v399_v55 = vpop.f32.mrb[3].mxu0 }
 0x51a   :  { %408 = vst.msk [vmem:[#allocation2] sm:$0xff] %vm213_vm10, %v399_v55 }
 0x51b   :  { %536 = shalt.err (!%p533_p4)
}
 0x51c   :  { %s537_s30 = scalar_lea.hbm %s624_s3, 256 }
 0x51d   :  { %p538_p5 = scmp.ne.s32.totalorder %s624_s3, %s537_s30  ;;  %p541_p6 = scmp.lt.u32.totalorder %s537_s30, %s624_s3 }
 0x51f   :  { %p543_p7 = pnand %p541_p6, %p538_p5 }
 0x521   :  { %546 = shalt.err (!%p543_p7)
}
 0x522   :  { %s552_s8 = smov 128   ;;  %s553_s9 = smov 8  }
 0x523   :  { %421 = dma.vmem_to_hbm [thread:$0]  %s416_s2, 256, %s624_s3, [#allocation3], %s552_s8, %s552_s8, %s553_s9  }
 0x524   :  { %547 = dma.done.wait [#allocation3], 256  }
 0x525   :  { %548 = vsyncadd [#allocation3], 4294967040 }
 0x526   :  { %425 = vsyncpa [#allocation3], 1 }

</bundles_post_ra>
